<compile_context>
chip_gen: v6e
topology: v6e:2x2x1
jax: 0.10.0
libtpu: 0.0.40
codegen_flags: <defaults>
</compile_context>

<pallas_src>
import functools

import jax
import jax.numpy as jnp
from jax.experimental import pallas as pl
from jax.experimental.pallas import tpu as pltpu


def _round_up(n: int, m: int) -> int:
    return (n + m - 1) // m * m


def decoder_kernel(x_ref, w1_ref, b1_ref, w2_ref, b2_ref, o_ref):
    # First linear + ReLU: MXU matmul with f32 accumulation, bias/ReLU on VPU.
    h = jnp.dot(x_ref[...], w1_ref[...], preferred_element_type=jnp.float32)
    h = jnp.maximum(h + b1_ref[...], 0.0)
    # Second linear (lane-dense padded output dim), f32 accumulation.
    y = jnp.dot(h.astype(w2_ref.dtype), w2_ref[...],
                preferred_element_type=jnp.float32)
    o_ref[...] = (y + b2_ref[...]).astype(o_ref.dtype)


@functools.partial(jax.jit, static_argnames=("block_m",))
def decoder_forward(x, w1, b1, w2, b2, *, block_m: int = 1024):
    """y = relu(x @ w1 + b1) @ w2 + b2.

    x:  (B, K)      w1: (K, H)   b1: (1, H)
    w2: (H, C)      b2: (1, C)   ->  (B, C)
    """
    B, K = x.shape
    H = w1.shape[1]
    C = w2.shape[1]

    # --- Lane / MXU friendly zero-padding (exact result). --------------------
    Kp = _round_up(K, 128)              # contraction lanes for the first matmul
    Cp = _round_up(C, 128)              # lane-dense output (no masked stores)
    bm = min(block_m, _round_up(B, 8))  # batch tile, multiple of 8 sublanes
    Bp = _round_up(B, bm)

    xp = jnp.pad(x, ((0, Bp - B), (0, Kp - K)))
    w1p = jnp.pad(w1, ((0, Kp - K), (0, 0)))
    w2p = jnp.pad(w2, ((0, 0), (0, Cp - C)))
    b2p = jnp.pad(b2, ((0, 0), (0, Cp - C)))

    grid = (Bp // bm,)

    itemsize = jnp.dtype(x.dtype).itemsize
    cost = pl.CostEstimate(
        flops=2 * B * (K * H + H * C),
        transcendentals=0,
        bytes_accessed=(xp.size + w1p.size + b1.size + w2p.size + b2p.size
                        + Bp * Cp) * itemsize,
    )

    out_padded = pl.pallas_call(
        decoder_kernel,
        out_shape=jax.ShapeDtypeStruct((Bp, Cp), x.dtype),
        grid_spec=pltpu.PrefetchScalarGridSpec(
            num_scalar_prefetch=0,
            grid=grid,
            in_specs=[
                # x tile marches over the batch; weights/biases stay resident.
                pl.BlockSpec((bm, Kp), lambda i: (i, 0)),
                pl.BlockSpec((Kp, H), lambda i: (0, 0)),
                pl.BlockSpec((1, H), lambda i: (0, 0)),
                pl.BlockSpec((H, Cp), lambda i: (0, 0)),
                pl.BlockSpec((1, Cp), lambda i: (0, 0)),
            ],
            out_specs=pl.BlockSpec((bm, Cp), lambda i: (i, 0)),
        ),
        compiler_params=pltpu.CompilerParams(
            # Batch tiles are independent -> shard across TCs on v7x megacore.
            dimension_semantics=("parallel",),
        ),
        cost_estimate=cost,
    )(xp, w1p, b1, w2p, b2p)

    # Strip batch / channel padding outside the kernel.
    return out_padded[:B, :C]


def reference_forward(x, w1, b1, w2, b2):
    h = jnp.maximum(x @ w1 + b1, 0.0)
    return h @ w2 + b2


if __name__ == "__main__":
    # Small shapes consistent with the module's forward:
    #   x: (batch, latent_dim); output: (batch, in_channels)
    batch, latent_dim, hidden, in_channels = 8, 32, 512, 4

    key = jax.random.PRNGKey(0)
    kx, kw1, kb1, kw2, kb2 = jax.random.split(key, 5)

    x = jax.random.normal(kx, (batch, latent_dim), dtype=jnp.float32)
    # Deterministic synthetic parameters (uniform like torch's default init scale).
    w1 = jax.random.uniform(kw1, (latent_dim, hidden), jnp.float32,
                            -1.0 / latent_dim ** 0.5, 1.0 / latent_dim ** 0.5)
    b1 = jax.random.uniform(kb1, (1, hidden), jnp.float32,
                            -1.0 / latent_dim ** 0.5, 1.0 / latent_dim ** 0.5)
    w2 = jax.random.uniform(kw2, (hidden, in_channels), jnp.float32,
                            -1.0 / hidden ** 0.5, 1.0 / hidden ** 0.5)
    b2 = jax.random.uniform(kb2, (1, in_channels), jnp.float32,
                            -1.0 / hidden ** 0.5, 1.0 / hidden ** 0.5)

    out = decoder_forward(x, w1, b1, w2, b2)
    jax.block_until_ready(out)

    ref = reference_forward(x, w1, b1, w2, b2)
    assert out.shape == (batch, in_channels)
    assert jnp.allclose(out, ref, atol=1e-4, rtol=1e-4)

    print("KERNEL_OK")
</pallas_src>

<mosaic_0001>
module attributes {stable_mosaic.version = 11 : i64} {
  func.func @decoder_kernel(%arg0: i32, %arg1: memref<8x128xf32, #tpu.memory_space<vmem>>, %arg2: memref<128x512xf32, #tpu.memory_space<vmem>>, %arg3: memref<1x512xf32, #tpu.memory_space<vmem>>, %arg4: memref<512x128xf32, #tpu.memory_space<vmem>>, %arg5: memref<1x128xf32, #tpu.memory_space<vmem>>, %arg6: memref<8x128xf32, #tpu.memory_space<vmem>>) attributes {dimension_semantics = [#tpu.dimension_semantics<parallel>], iteration_bounds = array<i64: 1>, scalar_prefetch = 0 : i64, scratch_operands = 0 : i64, tpu.core_type = #tpu.core_type<tc>, window_params = [{transform_indices = @transform_0, window_bounds = array<i64: 8, 128>}, {pipeline_mode = #tpu.pipeline_mode<synchronous>, transform_indices = @transform_1, window_bounds = array<i64: 128, 512>}, {pipeline_mode = #tpu.pipeline_mode<synchronous>, transform_indices = @transform_2, window_bounds = array<i64: 1, 512>}, {pipeline_mode = #tpu.pipeline_mode<synchronous>, transform_indices = @transform_3, window_bounds = array<i64: 512, 128>}, {pipeline_mode = #tpu.pipeline_mode<synchronous>, transform_indices = @transform_4, window_bounds = array<i64: 1, 128>}, {transform_indices = @transform_5, window_bounds = array<i64: 8, 128>}]} {
    %c0 = arith.constant 0 : index
    %c0_0 = arith.constant 0 : index
    %0 = vector.load %arg1[%c0, %c0_0] : memref<8x128xf32, #tpu.memory_space<vmem>>, vector<8x128xf32>
    %c0_1 = arith.constant 0 : index
    %c0_2 = arith.constant 0 : index
    %1 = vector.load %arg2[%c0_1, %c0_2] : memref<128x512xf32, #tpu.memory_space<vmem>>, vector<128x512xf32>
    %cst = arith.constant dense<0.000000e+00> : vector<8x512xf32>
    %2 = tpu.matmul %0, %1, %cst {dimension_numbers = #tpu.dot_dimension_numbers<[1], [0], [0], [1], [0, 0, 1, 1], [], []>} : vector<8x128xf32>, vector<128x512xf32>, vector<8x512xf32> -> vector<8x512xf32>
    %c0_3 = arith.constant 0 : index
    %c0_4 = arith.constant 0 : index
    %3 = vector.load %arg3[%c0_3, %c0_4] : memref<1x512xf32, #tpu.memory_space<vmem>>, vector<1x512xf32>
    %4 = vector.broadcast %3 : vector<1x512xf32> to vector<8x512xf32>
    %5 = arith.addf %2, %4 : vector<8x512xf32>
    %cst_5 = arith.constant 0.000000e+00 : f32
    %6 = vector.broadcast %cst_5 : f32 to vector<8x512xf32>
    %7 = arith.maximumf %5, %6 : vector<8x512xf32>
    %c0_6 = arith.constant 0 : index
    %c0_7 = arith.constant 0 : index
    %8 = vector.load %arg4[%c0_6, %c0_7] : memref<512x128xf32, #tpu.memory_space<vmem>>, vector<512x128xf32>
    %cst_8 = arith.constant dense<0.000000e+00> : vector<8x128xf32>
    %9 = tpu.matmul %7, %8, %cst_8 {dimension_numbers = #tpu.dot_dimension_numbers<[1], [0], [0], [1], [0, 0, 1, 1], [], []>} : vector<8x512xf32>, vector<512x128xf32>, vector<8x128xf32> -> vector<8x128xf32>
    %c0_9 = arith.constant 0 : index
    %c0_10 = arith.constant 0 : index
    %10 = vector.load %arg5[%c0_9, %c0_10] : memref<1x128xf32, #tpu.memory_space<vmem>>, vector<1x128xf32>
    %11 = vector.broadcast %10 : vector<1x128xf32> to vector<8x128xf32>
    %12 = arith.addf %9, %11 : vector<8x128xf32>
    %c0_11 = arith.constant 0 : index
    %c0_12 = arith.constant 0 : index
    %13 = vector.load %arg6[%c0_11, %c0_12] : memref<8x128xf32, #tpu.memory_space<vmem>>, vector<8x128xf32>
    tpu.vector_store %arg6[%c0_11, %c0_12], %12 {strides = array<i32>} : memref<8x128xf32, #tpu.memory_space<vmem>>, vector<8x128xf32>,
    return
  }
  func.func @transform_0(%arg0: i32) -> (i32, i32) {
    %c0_i32 = arith.constant 0 : i32
    %c0_i32_0 = arith.constant 0 : i32
    return %arg0, %c0_i32 : i32, i32
  }
  func.func @transform_1(%arg0: i32) -> (i32, i32) {
    %c0_i32 = arith.constant 0 : i32
    %c0_i32_0 = arith.constant 0 : i32
    %c0_i32_1 = arith.constant 0 : i32
    return %c0_i32, %c0_i32_0 : i32, i32
  }
  func.func @transform_2(%arg0: i32) -> (i32, i32) {
    %c0_i32 = arith.constant 0 : i32
    %c0_i32_0 = arith.constant 0 : i32
    %c0_i32_1 = arith.constant 0 : i32
    return %c0_i32, %c0_i32_0 : i32, i32
  }
  func.func @transform_3(%arg0: i32) -> (i32, i32) {
    %c0_i32 = arith.constant 0 : i32
    %c0_i32_0 = arith.constant 0 : i32
    %c0_i32_1 = arith.constant 0 : i32
    return %c0_i32, %c0_i32_0 : i32, i32
  }
  func.func @transform_4(%arg0: i32) -> (i32, i32) {
    %c0_i32 = arith.constant 0 : i32
    %c0_i32_0 = arith.constant 0 : i32
    %c0_i32_1 = arith.constant 0 : i32
    return %c0_i32, %c0_i32_0 : i32, i32
  }
  func.func @transform_5(%arg0: i32) -> (i32, i32) {
    %c0_i32 = arith.constant 0 : i32
    %c0_i32_0 = arith.constant 0 : i32
    return %arg0, %c0_i32 : i32, i32
  }
}

</mosaic_0001>

<bundles_post_ra>
// kernel: decoder_forward.1
= control target key start
LH: loop header
LB: loop body
LE: loop exit
PB: predicated region body
PF: predicated region fallthrough
CT: control target
= control target key end

     0   :  { %v541_v3 = vmov 0.0   ;;  %s968_s1 = inlined_call_operand.vmem [shape: f32[128,512], index: 1, kind: input, shape index: {}]   ;;  %s969_s0 = inlined_call_operand.vmem [shape: f32[8,128], index: 0, kind: input, shape index: {}]   ;;  %s970_s3 = inlined_call_operand.vmem [shape: f32[512,128], index: 3, kind: input, shape index: {}]   ;;  %s971_s2 = inlined_call_operand.vmem [shape: f32[1,512], index: 2, kind: input, shape index: {}]   ;;  %s972_s4 = inlined_call_operand.vmem [shape: f32[1,128], index: 4, kind: input, shape index: {}]   ;;  %s973_s5 = inlined_call_operand.vmem [shape: f32[8,128], index: 5, kind: output, shape index: {}]  }
   0x1   :  { %v82_v0 = vld [vmem:[%s968_s1 + $0x1e8] sm:$0xff]  ;;  %v84_v1 = vld [vmem:[%s968_s1 + $0x1f8] sm:$0xff]  ;;  %v81_v2 = vld [vmem:[%s968_s1 + $0x1e0] sm:$0xff]  ;;  %171 = vmatprep.mubr.f32.mxu0 %v541_v3  ;;  %242 = vmatprep.mubr.f32.mxu1 %v541_v3 }
   0x2   :  { %107 = vmatprep.subr.mxu0 %v82_v0  ;;  %178 = vmatprep.subr.mxu1 %v84_v1  ;;  %v83_v4 = vld [vmem:[%s968_s1 + $0x1f0] sm:$0xff]  ;;  %v78_v5 = vld [vmem:[%s968_s1 + $0x1c8] sm:$0xff]  ;;  %v80_v6 = vld [vmem:[%s968_s1 + $0x1d8] sm:$0xff] }
   0x3   :  { %108 = vmatpush1.msra.mxu0 %v81_v2  ;;  %179 = vmatpush1.msra.mxu1 %v83_v4  ;;  %v77_v7 = vld [vmem:[%s968_s1 + $0x1c0] sm:$0xff]  ;;  %v79_v8 = vld [vmem:[%s968_s1 + $0x1d0] sm:$0xff]  ;;  %v74_v9 = vld [vmem:[%s968_s1 + $0x1a8] sm:$0xff] }
   0x4   :  { %109 = vmatprep.subr.mxu0 %v78_v5  ;;  %180 = vmatprep.subr.mxu1 %v80_v6  ;;  %v76_v10 = vld [vmem:[%s968_s1 + $0x1b8] sm:$0xff]  ;;  %v73_v11 = vld [vmem:[%s968_s1 + $0x1a0] sm:$0xff]  ;;  %v75_v12 = vld [vmem:[%s968_s1 + $0x1b0] sm:$0xff] }
   0x5   :  { %110 = vmatpush1.msra.mxu0 %v77_v7  ;;  %181 = vmatpush1.msra.mxu1 %v79_v8  ;;  %v70_v13 = vld [vmem:[%s968_s1 + $0x188] sm:$0xff]  ;;  %v72_v14 = vld [vmem:[%s968_s1 + $0x198] sm:$0xff]  ;;  %v69_v15 = vld [vmem:[%s968_s1 + $0x180] sm:$0xff] }
   0x6   :  { %111 = vmatprep.subr.mxu0 %v74_v9  ;;  %182 = vmatprep.subr.mxu1 %v76_v10  ;;  %v71_v16 = vld [vmem:[%s968_s1 + $0x190] sm:$0xff]  ;;  %v66_v17 = vld [vmem:[%s968_s1 + $0x168] sm:$0xff]  ;;  %v68_v18 = vld [vmem:[%s968_s1 + $0x178] sm:$0xff] }
   0x7   :  { %112 = vmatpush1.msra.mxu0 %v73_v11  ;;  %183 = vmatpush1.msra.mxu1 %v75_v12  ;;  %v65_v19 = vld [vmem:[%s968_s1 + $0x160] sm:$0xff]  ;;  %v67_v20 = vld [vmem:[%s968_s1 + $0x170] sm:$0xff]  ;;  %v62_v21 = vld [vmem:[%s968_s1 + $0x148] sm:$0xff] }
   0x8   :  { %113 = vmatprep.subr.mxu0 %v70_v13  ;;  %184 = vmatprep.subr.mxu1 %v72_v14  ;;  %v64_v22 = vld [vmem:[%s968_s1 + $0x158] sm:$0xff]  ;;  %v61_v23 = vld [vmem:[%s968_s1 + $0x140] sm:$0xff]  ;;  %v63_v24 = vld [vmem:[%s968_s1 + $0x150] sm:$0xff] }
   0x9   :  { %114 = vmatpush1.msra.mxu0 %v69_v15  ;;  %185 = vmatpush1.msra.mxu1 %v71_v16  ;;  %v58_v25 = vld [vmem:[%s968_s1 + $0x128] sm:$0xff]  ;;  %v60_v26 = vld [vmem:[%s968_s1 + $0x138] sm:$0xff]  ;;  %v57_v27 = vld [vmem:[%s968_s1 + $0x120] sm:$0xff] }
   0xa   :  { %115 = vmatprep.subr.mxu0 %v66_v17  ;;  %186 = vmatprep.subr.mxu1 %v68_v18  ;;  %v59_v28 = vld [vmem:[%s968_s1 + $0x130] sm:$0xff]  ;;  %v54_v29 = vld [vmem:[%s968_s1 + $0x108] sm:$0xff]  ;;  %v56_v30 = vld [vmem:[%s968_s1 + $0x118] sm:$0xff] }
   0xb   :  { %116 = vmatpush1.msra.mxu0 %v65_v19  ;;  %187 = vmatpush1.msra.mxu1 %v67_v20  ;;  %v53_v31 = vld [vmem:[%s968_s1 + $0x100] sm:$0xff]  ;;  %v55_v32 = vld [vmem:[%s968_s1 + $0x110] sm:$0xff]  ;;  %v50_v33 = vld [vmem:[%s968_s1 + $0xe8] sm:$0xff] }
   0xc   :  { %117 = vmatprep.subr.mxu0 %v62_v21  ;;  %188 = vmatprep.subr.mxu1 %v64_v22  ;;  %v52_v34 = vld [vmem:[%s968_s1 + $0xf8] sm:$0xff]  ;;  %v49_v35 = vld [vmem:[%s968_s1 + $0xe0] sm:$0xff]  ;;  %v51_v36 = vld [vmem:[%s968_s1 + $0xf0] sm:$0xff] }
   0xd   :  { %118 = vmatpush1.msra.mxu0 %v61_v23  ;;  %189 = vmatpush1.msra.mxu1 %v63_v24  ;;  %v46_v37 = vld [vmem:[%s968_s1 + $0xc8] sm:$0xff]  ;;  %v48_v38 = vld [vmem:[%s968_s1 + $0xd8] sm:$0xff]  ;;  %v45_v39 = vld [vmem:[%s968_s1 + $0xc0] sm:$0xff] }
   0xe   :  { %119 = vmatprep.subr.mxu0 %v58_v25  ;;  %190 = vmatprep.subr.mxu1 %v60_v26  ;;  %v47_v40 = vld [vmem:[%s968_s1 + $0xd0] sm:$0xff]  ;;  %v42_v41 = vld [vmem:[%s968_s1 + $0xa8] sm:$0xff]  ;;  %v44_v42 = vld [vmem:[%s968_s1 + $0xb8] sm:$0xff] }
   0xf   :  { %120 = vmatpush1.msra.mxu0 %v57_v27  ;;  %191 = vmatpush1.msra.mxu1 %v59_v28  ;;  %v41_v43 = vld [vmem:[%s968_s1 + $0xa0] sm:$0xff]  ;;  %v43_v44 = vld [vmem:[%s968_s1 + $0xb0] sm:$0xff]  ;;  %v38_v45 = vld [vmem:[%s968_s1 + $0x88] sm:$0xff] }
  0x10   :  { %121 = vmatprep.subr.mxu0 %v54_v29  ;;  %192 = vmatprep.subr.mxu1 %v56_v30  ;;  %v40_v46 = vld [vmem:[%s968_s1 + $0x98] sm:$0xff]  ;;  %v37_v47 = vld [vmem:[%s968_s1 + $0x80] sm:$0xff]  ;;  %v39_v48 = vld [vmem:[%s968_s1 + $0x90] sm:$0xff] }
  0x11   :  { %122 = vmatpush1.msra.mxu0 %v53_v31  ;;  %193 = vmatpush1.msra.mxu1 %v55_v32  ;;  %v34_v49 = vld [vmem:[%s968_s1 + $0x68] sm:$0xff]  ;;  %v36_v50 = vld [vmem:[%s968_s1 + $0x78] sm:$0xff]  ;;  %v33_v51 = vld [vmem:[%s968_s1 + $0x60] sm:$0xff] }
  0x12   :  { %123 = vmatprep.subr.mxu0 %v50_v33  ;;  %194 = vmatprep.subr.mxu1 %v52_v34  ;;  %v35_v52 = vld [vmem:[%s968_s1 + $0x70] sm:$0xff]  ;;  %v30_v53 = vld [vmem:[%s968_s1 + $0x48] sm:$0xff]  ;;  %v32_v54 = vld [vmem:[%s968_s1 + $0x58] sm:$0xff] }
  0x13   :  { %124 = vmatpush1.msra.mxu0 %v49_v35  ;;  %195 = vmatpush1.msra.mxu1 %v51_v36  ;;  %v29_v55 = vld [vmem:[%s968_s1 + $0x40] sm:$0xff]  ;;  %v31_v56 = vld [vmem:[%s968_s1 + $0x50] sm:$0xff]  ;;  %v26_v57 = vld [vmem:[%s968_s1 + $0x28] sm:$0xff] }
  0x14   :  { %125 = vmatprep.subr.mxu0 %v46_v37  ;;  %196 = vmatprep.subr.mxu1 %v48_v38  ;;  %v28_v58 = vld [vmem:[%s968_s1 + $0x38] sm:$0xff]  ;;  %v25_v59 = vld [vmem:[%s968_s1 + $0x20] sm:$0xff]  ;;  %v27_v60 = vld [vmem:[%s968_s1 + $0x30] sm:$0xff] }
  0x15   :  { %126 = vmatpush1.msra.mxu0 %v45_v39  ;;  %197 = vmatpush1.msra.mxu1 %v47_v40  ;;  %v22_v61 = vld [vmem:[%s968_s1 + $0x8] sm:$0xff]  ;;  %v24_v62 = vld [vmem:[%s968_s1 + $0x18] sm:$0xff]  ;;  %v21_v63 = vld [vmem:[%s968_s1] sm:$0xff] }
  0x16   :  { %127 = vmatprep.subr.mxu0 %v42_v41  ;;  %198 = vmatprep.subr.mxu1 %v44_v42  ;;  %v23_v0 = vld [vmem:[%s968_s1 + $0x10] sm:$0xff]  ;;  %v20_v1 = vld [vmem:[%s969_s0] sm:$0xff]  ;;  %v284_v2 = vld [vmem:[%s970_s3 + $0xf8] sm:$0xff] }
  0x17   :  { %128 = vmatpush1.msra.mxu0 %v41_v43  ;;  %199 = vmatpush1.msra.mxu1 %v43_v44  ;;  %v316_v3 = vld [vmem:[%s970_s3 + $0x1f8] sm:$0xff]  ;;  %v283_v6 = vld [vmem:[%s970_s3 + $0xf0] sm:$0xff]  ;;  %v282_v10 = vld [vmem:[%s970_s3 + $0xe8] sm:$0xff] }
  0x18   :  { %129 = vmatprep.subr.mxu0 %v38_v45  ;;  %200 = vmatprep.subr.mxu1 %v40_v46  ;;  %v268_v4 = vld [vmem:[%s970_s3 + $0x78] sm:$0xff]  ;;  %v315_v7 = vld [vmem:[%s970_s3 + $0x1f0] sm:$0xff]  ;;  %v314_v11 = vld [vmem:[%s970_s3 + $0x1e8] sm:$0xff] }
  0x19   :  { %130 = vmatpush1.msra.mxu0 %v37_v47  ;;  %201 = vmatpush1.msra.mxu1 %v39_v48  ;;  %v300_v5 = vld [vmem:[%s970_s3 + $0x178] sm:$0xff]  ;;  %v267_v8 = vld [vmem:[%s970_s3 + $0x70] sm:$0xff]  ;;  %v266_v12 = vld [vmem:[%s970_s3 + $0x68] sm:$0xff] }
  0x1a   :  { %131 = vmatprep.subr.mxu0 %v34_v49  ;;  %202 = vmatprep.subr.mxu1 %v36_v50  ;;  %v299_v9 = vld [vmem:[%s970_s3 + $0x170] sm:$0xff]  ;;  %v298_v13 = vld [vmem:[%s970_s3 + $0x168] sm:$0xff]  ;;  %v281_v14 = vld [vmem:[%s970_s3 + $0xe0] sm:$0xff] }
  0x1b   :  { %132 = vmatpush1.msra.mxu0 %v33_v51  ;;  %203 = vmatpush1.msra.mxu1 %v35_v52  ;;  %v313_v15 = vld [vmem:[%s970_s3 + $0x1e0] sm:$0xff]  ;;  %v280_v18 = vld [vmem:[%s970_s3 + $0xd8] sm:$0xff]  ;;  %v279_v22 = vld [vmem:[%s970_s3 + $0xd0] sm:$0xff] }
  0x1c   :  { %133 = vmatprep.subr.mxu0 %v30_v53  ;;  %204 = vmatprep.subr.mxu1 %v32_v54  ;;  %v265_v16 = vld [vmem:[%s970_s3 + $0x60] sm:$0xff]  ;;  %v312_v19 = vld [vmem:[%s970_s3 + $0x1d8] sm:$0xff]  ;;  %v311_v23 = vld [vmem:[%s970_s3 + $0x1d0] sm:$0xff] }
  0x1d   :  { %134 = vmatpush1.msra.mxu0 %v29_v55  ;;  %205 = vmatpush1.msra.mxu1 %v31_v56  ;;  %v297_v17 = vld [vmem:[%s970_s3 + $0x160] sm:$0xff]  ;;  %v264_v20 = vld [vmem:[%s970_s3 + $0x58] sm:$0xff]  ;;  %v263_v24 = vld [vmem:[%s970_s3 + $0x50] sm:$0xff] }
  0x1e   :  { %135 = vmatprep.subr.mxu0 %v26_v57  ;;  %206 = vmatprep.subr.mxu1 %v28_v58  ;;  %v296_v21 = vld [vmem:[%s970_s3 + $0x158] sm:$0xff]  ;;  %v295_v25 = vld [vmem:[%s970_s3 + $0x150] sm:$0xff]  ;;  %v278_v26 = vld [vmem:[%s970_s3 + $0xc8] sm:$0xff] }
  0x1f   :  { %136 = vmatpush1.msra.mxu0 %v25_v59  ;;  %207 = vmatpush1.msra.mxu1 %v27_v60  ;;  %v310_v27 = vld [vmem:[%s970_s3 + $0x1c8] sm:$0xff]  ;;  %v277_v30 = vld [vmem:[%s970_s3 + $0xc0] sm:$0xff]  ;;  %v276_v34 = vld [vmem:[%s970_s3 + $0xb8] sm:$0xff] }
  0x20   :  { %137 = vmatprep.subr.mxu0 %v22_v61  ;;  %208 = vmatprep.subr.mxu1 %v24_v62  ;;  %v262_v28 = vld [vmem:[%s970_s3 + $0x48] sm:$0xff]  ;;  %v309_v31 = vld [vmem:[%s970_s3 + $0x1c0] sm:$0xff]  ;;  %v308_v35 = vld [vmem:[%s970_s3 + $0x1b8] sm:$0xff] }
  0x21   :  { %138 = vmatpush1.msra.mxu0 %v21_v63  ;;  %209 = vmatpush1.msra.mxu1 %v23_v0  ;;  %v294_v29 = vld [vmem:[%s970_s3 + $0x148] sm:$0xff]  ;;  %v261_v32 = vld [vmem:[%s970_s3 + $0x40] sm:$0xff]  ;;  %v260_v36 = vld [vmem:[%s970_s3 + $0x38] sm:$0xff] }
  0x22   :  { %172 = vmatmul.mubr.f32.vlgmr.msra.gmra.mxu0 %v20_v1  ;;  %243 = vmatmul.mubr.f32.vlgmr.msra.gmra.mxu1 %v20_v1  ;;  %v293_v33 = vld [vmem:[%s970_s3 + $0x140] sm:$0xff]  ;;  %v292_v37 = vld [vmem:[%s970_s3 + $0x138] sm:$0xff]  ;;  %v275_v38 = vld [vmem:[%s970_s3 + $0xb0] sm:$0xff] }
  0x23   :  { %470 = vmatprep.subr.mxu0 %v284_v2  ;;  %505 = vmatprep.subr.mxu1 %v316_v3  ;;  %v307_v39 = vld [vmem:[%s970_s3 + $0x1b0] sm:$0xff]  ;;  %v274_v42 = vld [vmem:[%s970_s3 + $0xa8] sm:$0xff]  ;;  %v273_v46 = vld [vmem:[%s970_s3 + $0xa0] sm:$0xff]  ;;  %v87_v2 = vlaneseq }
  0x24   :  { %471 = vmatpush3.msra.mxu0 %v268_v4  ;;  %506 = vmatpush3.msra.mxu1 %v300_v5  ;;  %v259_v40 = vld [vmem:[%s970_s3 + $0x30] sm:$0xff]  ;;  %v306_v43 = vld [vmem:[%s970_s3 + $0x1a8] sm:$0xff]  ;;  %v305_v47 = vld [vmem:[%s970_s3 + $0x1a0] sm:$0xff] }
  0x25   :  { %472 = vmatprep.subr.mxu0 %v283_v6  ;;  %507 = vmatprep.subr.mxu1 %v315_v7  ;;  %v291_v41 = vld [vmem:[%s970_s3 + $0x130] sm:$0xff]  ;;  %v258_v44 = vld [vmem:[%s970_s3 + $0x28] sm:$0xff]  ;;  %v257_v48 = vld [vmem:[%s970_s3 + $0x20] sm:$0xff]  ;;  %v88_v3 = vshrl.u32 %v87_v2, 7 }
  0x26   :  { %473 = vmatpush3.msra.mxu0 %v267_v8  ;;  %508 = vmatpush3.msra.mxu1 %v299_v9  ;;  %v290_v45 = vld [vmem:[%s970_s3 + $0x128] sm:$0xff]  ;;  %v289_v49 = vld [vmem:[%s970_s3 + $0x120] sm:$0xff]  ;;  %v272_v50 = vld [vmem:[%s970_s3 + $0x98] sm:$0xff] }
  0x27   :  { %474 = vmatprep.subr.mxu0 %v282_v10  ;;  %509 = vmatprep.subr.mxu1 %v314_v11  ;;  %v304_v51 = vld [vmem:[%s970_s3 + $0x198] sm:$0xff]  ;;  %v271_v54 = vld [vmem:[%s970_s3 + $0x90] sm:$0xff]  ;;  %v270_v58 = vld [vmem:[%s970_s3 + $0x88] sm:$0xff]  ;;  %v97_v4 = vsub.s32 2, %v88_v3  ;;  %v89_v5 = vsub.s32 0, %v88_v3  ;;  %v93_v7 = vsub.s32 1, %v88_v3 }
  0x28   :  { %475 = vmatpush3.msra.mxu0 %v266_v12  ;;  %510 = vmatpush3.msra.mxu1 %v298_v13  ;;  %v256_v52 = vld [vmem:[%s970_s3 + $0x18] sm:$0xff]  ;;  %v303_v55 = vld [vmem:[%s970_s3 + $0x190] sm:$0xff]  ;;  %v302_v59 = vld [vmem:[%s970_s3 + $0x188] sm:$0xff]  ;;  %v101_v8 = vsub.s32 3, %v88_v3 }
  0x29   :  { %476 = vmatprep.subr.mxu0 %v281_v14  ;;  %511 = vmatprep.subr.mxu1 %v313_v15  ;;  %v288_v53 = vld [vmem:[%s970_s3 + $0x118] sm:$0xff]  ;;  %v255_v56 = vld [vmem:[%s970_s3 + $0x10] sm:$0xff]  ;;  %v254_v60 = vld [vmem:[%s970_s3 + $0x8] sm:$0xff] }
  0x2a   :  { %477 = vmatpush3.msra.mxu0 %v265_v16  ;;  %512 = vmatpush3.msra.mxu1 %v297_v17  ;;  %v287_v57 = vld [vmem:[%s970_s3 + $0x110] sm:$0xff]  ;;  %v286_v61 = vld [vmem:[%s970_s3 + $0x108] sm:$0xff]  ;;  %v269_v62 = vld [vmem:[%s970_s3 + $0x80] sm:$0xff] }
  0x2b   :  { %478 = vmatprep.subr.mxu0 %v280_v18  ;;  %513 = vmatprep.subr.mxu1 %v312_v19  ;;  %v301_v63 = vld [vmem:[%s970_s3 + $0x180] sm:$0xff] }
  0x2c   :  { %479 = vmatpush3.msra.mxu0 %v264_v20  ;;  %514 = vmatpush3.msra.mxu1 %v296_v21  ;;  %v253_v0 = vld [vmem:[%s970_s3] sm:$0xff] }
  0x2d   :  { %480 = vmatprep.subr.mxu0 %v279_v22  ;;  %515 = vmatprep.subr.mxu1 %v311_v23  ;;  %v285_v1 = vld [vmem:[%s970_s3 + $0x100] sm:$0xff] }
  0x2e   :  { %481 = vmatpush3.msra.mxu0 %v263_v24  ;;  %516 = vmatpush3.msra.mxu1 %v295_v25  ;;  %v85_v6 = vld [vmem:[%s971_s2] sm:$0xf] }
  0x2f   :  { %482 = vmatprep.subr.mxu0 %v278_v26  ;;  %517 = vmatprep.subr.mxu1 %v310_v27  ;;  %v98_v9 = vrot.slane %v85_v6, %v97_v4  ;;  %v90_v10 = vrot.slane %v85_v6, %v89_v5  ;;  %v94_v11 = vrot.slane %v85_v6, %v93_v7  ;;  %v469_v27 = vld [vmem:[%s972_s4] ss:$0 sm:$0xff] }
  0x30   :  { %483 = vmatpush3.msra.mxu0 %v262_v28  ;;  %518 = vmatpush3.msra.mxu1 %v294_v29  ;;  %v102_v12 = vrot.slane %v85_v6, %v101_v8 }
  0x31   :  { %484 = vmatprep.subr.mxu0 %v277_v30  ;;  %519 = vmatprep.subr.mxu1 %v309_v31 }
  0x32   :  { %485 = vmatpush3.msra.mxu0 %v261_v32  ;;  %520 = vmatpush3.msra.mxu1 %v293_v33 }
  0x33   :  { %486 = vmatprep.subr.mxu0 %v276_v34  ;;  %521 = vmatprep.subr.mxu1 %v308_v35 }
  0x34   :  { %487 = vmatpush3.msra.mxu0 %v260_v36  ;;  %522 = vmatpush3.msra.mxu1 %v292_v37 }
  0x35   :  { %488 = vmatprep.subr.mxu0 %v275_v38  ;;  %523 = vmatprep.subr.mxu1 %v307_v39 }
  0x36   :  { %489 = vmatpush3.msra.mxu0 %v259_v40  ;;  %524 = vmatpush3.msra.mxu1 %v291_v41 }
  0x37   :  { %490 = vmatprep.subr.mxu0 %v274_v42  ;;  %525 = vmatprep.subr.mxu1 %v306_v43 }
  0x38   :  { %491 = vmatpush3.msra.mxu0 %v258_v44  ;;  %526 = vmatpush3.msra.mxu1 %v290_v45 }
  0x39   :  { %492 = vmatprep.subr.mxu0 %v273_v46  ;;  %527 = vmatprep.subr.mxu1 %v305_v47 }
  0x3a   :  { %493 = vmatpush3.msra.mxu0 %v257_v48  ;;  %528 = vmatpush3.msra.mxu1 %v289_v49 }
  0x3b   :  { %494 = vmatprep.subr.mxu0 %v272_v50  ;;  %529 = vmatprep.subr.mxu1 %v304_v51 }
  0x3c   :  { %495 = vmatpush3.msra.mxu0 %v256_v52  ;;  %530 = vmatpush3.msra.mxu1 %v288_v53 }
  0x3d   :  { %496 = vmatprep.subr.mxu0 %v271_v54  ;;  %531 = vmatprep.subr.mxu1 %v303_v55 }
  0x3e   :  { %497 = vmatpush3.msra.mxu0 %v255_v56  ;;  %532 = vmatpush3.msra.mxu1 %v287_v57 }
  0x3f   :  { %498 = vmatprep.subr.mxu0 %v270_v58  ;;  %533 = vmatprep.subr.mxu1 %v302_v59 }
  0x40   :  { %499 = vmatpush3.msra.mxu0 %v254_v60  ;;  %534 = vmatpush3.msra.mxu1 %v286_v61 }
  0x41   :  { %500 = vmatprep.subr.mxu0 %v269_v62  ;;  %535 = vmatprep.subr.mxu1 %v301_v63 }
  0x42   :  { %501 = vmatpush3.msra.mxu0 %v253_v0  ;;  %536 = vmatpush3.msra.mxu1 %v285_v1 }
  0xe2   :  { %v173_v13 = vpop.f32.mrf.mxu0  ;;  %v244_v14 = vpop.f32.mrf.mxu1 }
  0xe3   :  { %v245_v15 = vadd.f32 %v244_v14, %v98_v9  ;;  %v174_v16 = vadd.f32 %v173_v13, %v90_v10 }
  0xe4   :  { %v175_v17 = vpop.f32.mrf.mxu0  ;;  %v246_v18 = vpop.f32.mrf.mxu1 }
  0xe5   :  { %v176_v19 = vadd.f32 %v175_v17, %v94_v11  ;;  %v247_v20 = vadd.f32 %v246_v18, %v102_v12  ;;  %v251_v21 = vmax.f32 %v245_v15, 0.0  ;;  %v249_v24 = vmax.f32 %v174_v16, 0.0 }
  0xe7   :  { %v250_v22 = vmax.f32 %v176_v19, 0.0  ;;  %v252_v23 = vmax.f32 %v247_v20, 0.0 }
  0xe9   :  { %388 = vmatprep.mubr.f32.mxu0 %v250_v22  ;;  %458 = vmatprep.mubr.f32.mxu1 %v252_v23 }
  0xea   :  { %389 = vmatmul.mubr.f32.vlgmr.msra.gmra.mxu0 %v249_v24  ;;  %459 = vmatmul.mubr.f32.vlgmr.msra.gmra.mxu1 %v251_v21 }
 0x1aa   :  { %v502_v25 = vpop.f32.mrf.mxu0  ;;  %v537_v26 = vpop.f32.mrf.mxu1 }
 0x1ac   :  { %v503_v28 = vpop.f32.mrf.mxu0  ;;  %v538_v29 = vpop.f32.mrf.mxu1 }
 0x1ad   :  { %v504_v30 = vadd.f32 %v503_v28, %v502_v25  ;;  %v539_v32 = vadd.f32 %v538_v29, %v537_v26 }
 0x1af   :  { %v391_v31 = vadd.f32 %v504_v30, %v469_v27 }
 0x1b1   :  { %v461_v33 = vadd.f32 %v539_v32, %v391_v31 }
 0x1b3   :  { %464 = vst [vmem:[%s973_s5] sm:$0xff] %v461_v33 }

</bundles_post_ra>
